<compile_context>
chip_gen: v6e
topology: v6e:2x2x1
jax: 0.10.0
libtpu: 0.0.40
codegen_flags: <defaults>
</compile_context>

<pallas_src>
import functools
import math

import jax
import jax.numpy as jnp
from jax.experimental import pallas as pl
from jax.experimental.pallas import tpu as pltpu


def _round_up(x, m):
    return (x + m - 1) // m * m


def _equalized_linear_kernel(x_ref, wt_ref, b_ref, o_ref, acc_ref):
    # x_ref : (tm, tk)   wt_ref : (tk, tn)   b_ref : (1, tn)
    # o_ref : (tm, tn)   acc_ref: (tm, tn) f32 scratch (persists across k)
    k = pl.program_id(2)

    @pl.when(k == 0)
    def _():
        acc_ref[...] = jnp.zeros_like(acc_ref)

    # Feed the MXU straight from the VMEM tiles; f32 accumulation via
    # preferred_element_type (bf16 operands use the native fast path).
    acc_ref[...] += jax.lax.dot_general(
        x_ref[...],
        wt_ref[...],
        dimension_numbers=(((1,), (0,)), ((), ())),
        preferred_element_type=jnp.float32,
    )

    @pl.when(k == pl.num_programs(2) - 1)
    def _():
        # Scale is already folded into the weight; only the bias add remains.
        o_ref[...] = (acc_ref[...] + b_ref[...].astype(jnp.float32)).astype(o_ref.dtype)


def prepare_equalized_linear_params(weight, bias, *, param_dtype=None):
    """One-time parameter prep — call at parameter load, NOT per forward.

    * Folds the equalized-lr scale into the weight (exact: (w*s).T == w.T*s).
    * Transposes to (K, N) so the MXU contracts the sublane axis natively and
      the output is lane-dense along N.
    * Optionally casts to bf16 to halve streamed weight bytes (f32
      accumulation is preserved inside the kernel).
    """
    n, k = weight.shape
    scale = 1.0 / math.sqrt(k)
    wt = (weight * scale).T  # (K, N), scale folded in f32
    if param_dtype is not None:
        wt = wt.astype(param_dtype)
    bias2d = bias.reshape(1, n)
    return wt, bias2d


def _pick_tiles(m, k, n_pad):
    # tm: batch tile.  Cap at 256 to bound weight re-streams (M/tm) and
    # per-step VMEM; small batches just use the (8-aligned) full batch since
    # the kernel is weight-bandwidth bound there anyway.
    tm = min(256, _round_up(m, 8))

    # tn: lane-dense (multiple of 128), <=512 to bound the streamed (tk, tn)
    # weight tile, and prefer >=2 blocks along N so the v7x megacore can shard.
    tn = n_pad
    for t in (512, 256, 128):
        if n_pad % t == 0 and n_pad // t >= 2:
            tn = t
            break

    # tk: contraction tile.  Multiple of 128 when K is tiled; otherwise the
    # (small) full-K extent as a single block.
    if k % 128 == 0:
        tk = 128
        for t in (512, 384, 256, 128):
            if k % t == 0:
                tk = t
                break
    else:
        tk = k  # full-K block (caller guarantees small K here)
    return tm, tn, tk


def equalized_linear_apply(x, wt, bias2d):
    """y = x @ wt + bias, with wt = (weight * 1/sqrt(K)).T prepared once."""
    M, K = x.shape
    K2, N = wt.shape
    assert K == K2, "in_features mismatch"
    assert bias2d.shape == (1, N)
    out_dtype = x.dtype

    # Zero-pad K to 128 alignment only when K must be tiled (exact for dot).
    if K % 128 != 0 and K > 1024:
        k_pad = _round_up(K, 128)
        x = jnp.pad(x, ((0, 0), (0, k_pad - K)))
        wt = jnp.pad(wt, ((0, k_pad - K), (0, 0)))
        K = k_pad

    # Lane-dense output: pad N to a multiple of 128 (avoids masked stores).
    N_pad = _round_up(N, 128)
    if N_pad != N:
        wt = jnp.pad(wt, ((0, 0), (0, N_pad - N)))
        bias2d = jnp.pad(bias2d, ((0, 0), (0, N_pad - N)))

    tm, tn, tk = _pick_tiles(M, K, N_pad)

    # Pad the batch axis so it tiles cleanly.
    M_pad = _round_up(M, tm)
    if M_pad != M:
        x = jnp.pad(x, ((0, M_pad - M), (0, 0)))

    # Match matmul operand dtypes (bf16 weights -> bf16 activations on the
    # MXU fast path); accumulation stays f32 in the kernel.
    if x.dtype != wt.dtype:
        x = x.astype(wt.dtype)

    grid = (M_pad // tm, N_pad // tn, K // tk)

    in_bytes = jnp.dtype(wt.dtype).itemsize
    out_bytes = jnp.dtype(out_dtype).itemsize
    # Double-buffered input tiles + double-buffered output tile + f32 scratch.
    vmem_est = (2 * (tm * tk + tk * tn) * in_bytes
                + 2 * tm * tn * out_bytes
                + tm * tn * 4
                + 2 * tn * 4)
    vmem_limit = int(min(64 << 20, max(2 * vmem_est, 32 << 20)))

    cost = pl.CostEstimate(
        flops=2 * M_pad * N_pad * K,
        bytes_accessed=(M_pad * K * in_bytes * (N_pad // tn)       # x re-reads
                        + K * N_pad * in_bytes * (M_pad // tm)     # weight re-reads
                        + M_pad * N_pad * out_bytes                # output
                        + N_pad * 4),                              # bias
        transcendentals=0,
    )

    out = pl.pallas_call(
        _equalized_linear_kernel,
        out_shape=jax.ShapeDtypeStruct((M_pad, N_pad), out_dtype),
        grid_spec=pltpu.PrefetchScalarGridSpec(
            num_scalar_prefetch=0,
            grid=grid,
            in_specs=[
                pl.BlockSpec((tm, tk), lambda i, j, k: (i, k)),   # activations
                pl.BlockSpec((tk, tn), lambda i, j, k: (k, j)),   # weight^T, streamed
                pl.BlockSpec((1, tn), lambda i, j, k: (0, j)),    # bias (re-DMA only when j changes)
            ],
            out_specs=pl.BlockSpec((tm, tn), lambda i, j, k: (i, j)),
            scratch_shapes=[pltpu.VMEM((tm, tn), jnp.float32)],
        ),
        compiler_params=pltpu.CompilerParams(
            dimension_semantics=("parallel", "parallel", "arbitrary"),
            vmem_limit_bytes=vmem_limit,
        ),
        cost_estimate=cost,
    )(x, wt, bias2d)

    if M_pad != M or N_pad != N:
        out = out[:M, :N]
    return out


def equalized_linear(x, weight, bias, *, param_dtype=None):
    """Convenience wrapper: prep params then apply (prefer prepping once)."""
    wt, bias2d = prepare_equalized_linear_params(weight, bias, param_dtype=param_dtype)
    return equalized_linear_apply(x, wt, bias2d)


if __name__ == "__main__":
    key = jax.random.PRNGKey(0)
    k_x, k_w = jax.random.split(key)

    batch = 8
    in_features = 32
    out_features = 64
    bias_init = 0.0

    # Deterministic parameter init mirroring the module's __init__:
    #   weight ~ randn(out_features, in_features), bias = ones * bias_init
    weight = jax.random.normal(k_w, (out_features, in_features), dtype=jnp.float32)
    bias = jnp.ones((out_features,), dtype=jnp.float32) * bias_init
    x = jax.random.normal(k_x, (batch, in_features), dtype=jnp.float32)

    scale = 1.0 / math.sqrt(in_features)
    y_ref = x @ (weight * scale).T + bias

    # --- f32 path: exact semantics of F.linear(x, weight*scale, bias) ---
    wt_f32, b2 = prepare_equalized_linear_params(weight, bias)
    y = jax.block_until_ready(equalized_linear_apply(x, wt_f32, b2))
    assert y.shape == (batch, out_features)
    assert jnp.allclose(y, y_ref, atol=1e-4, rtol=1e-4), "f32 mismatch vs reference"

    # --- bf16 weight/activation streaming path (f32 accumulation) ---
    wt_bf16, b2_bf16 = prepare_equalized_linear_params(
        weight, bias, param_dtype=jnp.bfloat16)
    y16 = jax.block_until_ready(equalized_linear_apply(x, wt_bf16, b2_bf16))
    y_ref_bf16 = (x.astype(jnp.bfloat16).astype(jnp.float32)
                  @ wt_bf16.astype(jnp.float32)) + bias
    assert y16.shape == (batch, out_features)
    assert jnp.allclose(y16, y_ref_bf16, atol=5e-3, rtol=5e-3), "bf16 mismatch"

    print("KERNEL_OK")
</pallas_src>

<mosaic_0001>
module attributes {stable_mosaic.version = 11 : i64} {
  func.func @_equalized_linear_kernel(%arg0: i32, %arg1: i32, %arg2: i32, %arg3: memref<8x32xf32, #tpu.memory_space<vmem>>, %arg4: memref<32x128xf32, #tpu.memory_space<vmem>>, %arg5: memref<1x128xf32, #tpu.memory_space<vmem>>, %arg6: memref<8x128xf32, #tpu.memory_space<vmem>>, %arg7: memref<8x128xf32, #tpu.memory_space<vmem>>) attributes {dimension_semantics = [#tpu.dimension_semantics<parallel>, #tpu.dimension_semantics<parallel>, #tpu.dimension_semantics<arbitrary>], iteration_bounds = array<i64: 1, 1, 1>, scalar_prefetch = 0 : i64, scratch_operands = 1 : i64, tpu.core_type = #tpu.core_type<tc>, window_params = [{transform_indices = @transform_0, window_bounds = array<i64: 8, 32>}, {transform_indices = @transform_1, window_bounds = array<i64: 32, 128>}, {transform_indices = @transform_2, window_bounds = array<i64: 1, 128>}, {transform_indices = @transform_3, window_bounds = array<i64: 8, 128>}]} {
    %c0_i32 = arith.constant 0 : i32
    %0 = arith.cmpi eq, %arg2, %c0_i32 : i32
    %1 = arith.extui %0 : i1 to i32
    %c0_i32_0 = arith.constant 0 : i32
    %2 = arith.cmpi ne, %1, %c0_i32_0 : i32
    scf.if %2 {
      %cst_10 = arith.constant 0.000000e+00 : f32
      %12 = vector.broadcast %cst_10 : f32 to vector<8x128xf32>
      %c0_11 = arith.constant 0 : index
      %c0_12 = arith.constant 0 : index
      %13 = vector.load %arg7[%c0_11, %c0_12] : memref<8x128xf32, #tpu.memory_space<vmem>>, vector<8x128xf32>
      tpu.vector_store %arg7[%c0_11, %c0_12], %12 {strides = array<i32>} : memref<8x128xf32, #tpu.memory_space<vmem>>, vector<8x128xf32>,
    } else {
    }
    %c0 = arith.constant 0 : index
    %c0_1 = arith.constant 0 : index
    %3 = vector.load %arg7[%c0, %c0_1] : memref<8x128xf32, #tpu.memory_space<vmem>>, vector<8x128xf32>
    %c0_2 = arith.constant 0 : index
    %c0_3 = arith.constant 0 : index
    %4 = vector.load %arg3[%c0_2, %c0_3] : memref<8x32xf32, #tpu.memory_space<vmem>>, vector<8x32xf32>
    %c0_4 = arith.constant 0 : index
    %c0_5 = arith.constant 0 : index
    %5 = vector.load %arg4[%c0_4, %c0_5] : memref<32x128xf32, #tpu.memory_space<vmem>>, vector<32x128xf32>
    %cst = arith.constant dense<0.000000e+00> : vector<8x128xf32>
    %6 = tpu.matmul %4, %5, %cst {dimension_numbers = #tpu.dot_dimension_numbers<[1], [0], [0], [1], [0, 0, 1, 1], [], []>} : vector<8x32xf32>, vector<32x128xf32>, vector<8x128xf32> -> vector<8x128xf32>
    %7 = arith.addf %3, %6 : vector<8x128xf32>
    %c0_6 = arith.constant 0 : index
    %c0_7 = arith.constant 0 : index
    %8 = vector.load %arg7[%c0_6, %c0_7] : memref<8x128xf32, #tpu.memory_space<vmem>>, vector<8x128xf32>
    tpu.vector_store %arg7[%c0_6, %c0_7], %7 {strides = array<i32>} : memref<8x128xf32, #tpu.memory_space<vmem>>, vector<8x128xf32>,
    %c0_i32_8 = arith.constant 0 : i32
    %9 = arith.cmpi eq, %arg2, %c0_i32_8 : i32
    %10 = arith.extui %9 : i1 to i32
    %c0_i32_9 = arith.constant 0 : i32
    %11 = arith.cmpi ne, %10, %c0_i32_9 : i32
    scf.if %11 {
      %c0_10 = arith.constant 0 : index
      %c0_11 = arith.constant 0 : index
      %12 = vector.load %arg7[%c0_10, %c0_11] : memref<8x128xf32, #tpu.memory_space<vmem>>, vector<8x128xf32>
      %c0_12 = arith.constant 0 : index
      %c0_13 = arith.constant 0 : index
      %13 = vector.load %arg5[%c0_12, %c0_13] : memref<1x128xf32, #tpu.memory_space<vmem>>, vector<1x128xf32>
      %14 = vector.broadcast %13 : vector<1x128xf32> to vector<8x128xf32>
      %15 = arith.addf %12, %14 : vector<8x128xf32>
      %c0_14 = arith.constant 0 : index
      %c0_15 = arith.constant 0 : index
      %16 = vector.load %arg6[%c0_14, %c0_15] : memref<8x128xf32, #tpu.memory_space<vmem>>, vector<8x128xf32>
      tpu.vector_store %arg6[%c0_14, %c0_15], %15 {strides = array<i32>} : memref<8x128xf32, #tpu.memory_space<vmem>>, vector<8x128xf32>,
    } else {
    }
    return
  }
  func.func @transform_0(%arg0: i32, %arg1: i32, %arg2: i32) -> (i32, i32) {
    %c0_i32 = arith.constant 0 : i32
    return %arg0, %arg2 : i32, i32
  }
  func.func @transform_1(%arg0: i32, %arg1: i32, %arg2: i32) -> (i32, i32) {
    %c0_i32 = arith.constant 0 : i32
    return %arg2, %arg1 : i32, i32
  }
  func.func @transform_2(%arg0: i32, %arg1: i32, %arg2: i32) -> (i32, i32) {
    %c0_i32 = arith.constant 0 : i32
    %c0_i32_0 = arith.constant 0 : i32
    return %c0_i32, %arg1 : i32, i32
  }
  func.func @transform_3(%arg0: i32, %arg1: i32, %arg2: i32) -> (i32, i32) {
    %c0_i32 = arith.constant 0 : i32
    return %arg0, %arg1 : i32, i32
  }
}

</mosaic_0001>

<bundles_post_ra>
// kernel: tpu_custom_call.1
= control target key start
LH: loop header
LB: loop body
LE: loop exit
PB: predicated region body
PF: predicated region fallthrough
CT: control target
= control target key end

     0   :  { %8 = vsyncpa [#allocation4], 0  ;;  %s287_s0 = inlined_call_operand.hbm [shape: f32[8,32], index: 0, kind: input, shape index: {}]   ;;  %s288_s1 = inlined_call_operand.hbm [shape: f32[32,128], index: 1, kind: input, shape index: {}]   ;;  %s289_s2 = inlined_call_operand.vmem [shape: f32[1,128], index: 2, kind: input, shape index: {}]   ;;  %s290_s3 = inlined_call_operand.hbm [shape: f32[8,128], index: 3, kind: output, shape index: {}]  }
   0x1   :  { %9 = vsyncpa [#allocation7], 0 }
   0x2   :  { %10 = vsyncpa [#allocation5], 0  ;;  %s248_s12 = smov [#allocation3]   ;;  %s249_s14 = smov [#allocation6]  }
   0x3   :  { %s17_s13 = sshll.u32 %s248_s12, 4  ;;  %s26_s15 = sshll.u32 %s249_s14, 4  ;;  %s18_s13 = int_to_ptr.vmem [resolvable:$true] %s17_s13  ;;  %s27_s15 = int_to_ptr.vmem [resolvable:$true] %s26_s15 }
   0x4   :  { %s190_s16 = scalar_lea.vmem %s18_s13, 128  ;;  %p195_p1 = scmp.lt.s32.totalorder %s18_s13, %s18_s13 }
   0x5   :  { %p191_p0 = scmp.ne.s32.totalorder %s18_s13, %s190_s16  ;;  %p196_p2 = scmp.lt.s32.totalorder %s190_s16, %s190_s16 }
   0x7   :  { %p197_p3 = por %p196_p2, %p195_p1 }
   0x9   :  { %p198_p4 = pnand %p197_p3, %p191_p0 }
   0xb   :  { %201 = shalt.err (!%p198_p4)
}
   0xc   :  { %20 = dma.hbm_to_vmem [thread:$0]  %s287_s0, 128, %s18_s13, [#allocation4]  }
   0xd   :  { %s210_s19 = scalar_lea.vmem %s27_s15, 512  ;;  %p215_p6 = scmp.lt.s32.totalorder %s27_s15, %s27_s15 }
   0xe   :  { %p211_p5 = scmp.ne.s32.totalorder %s27_s15, %s210_s19  ;;  %p216_p7 = scmp.lt.s32.totalorder %s210_s19, %s210_s19 }
  0x10   :  { %p217_p8 = por %p216_p7, %p215_p6 }
  0x12   :  { %p218_p9 = pnand %p217_p8, %p211_p5 }
  0x14   :  { %221 = shalt.err (!%p218_p9)
}
  0x15   :  { %s250_s20 = smov 128   ;;  %s251_s21 = smov 8  }
  0x16   :  { %32 = dma.hbm_to_vmem [thread:$0]  %s288_s1, 512, %s27_s15, [#allocation7], %s250_s20, %s250_s20, %s251_s21  }
  0x17   :  { %242 = dma.done.wait [#allocation4], 128  }
  0x18   :  { %243 = vsyncadd [#allocation4], 4294967168 }
  0x19   :  { %244 = dma.done.wait [#allocation7], 512  }
  0x1a   :  { %245 = vsyncadd [#allocation7], 4294966784  ;;  %v252_v0 = vmov 0.0   ;;  %vm253_vm0 = vmmov 0   ;;  %v51_v1 = vld [vmem:[#allocation6 + $0x18] sm:$0xff]  ;;  %v50_v2 = vld [vmem:[#allocation6 + $0x10] sm:$0xff] }
  0x1b   :  { %164 = vmatprep.subr.mxu0 %v252_v0  ;;  %172 = vmatprep.mubr.msk.f32.mxu0 %vm253_vm0, %v252_v0  ;;  %v49_v3 = vld [vmem:[#allocation6 + $0x8] sm:$0xff]  ;;  %v48_v4 = vld [vmem:[#allocation6] sm:$0xff]  ;;  %v47_v5 = vld [vmem:[#allocation3] sm:$0xff]  ;;  %vm52_vm1 = vcmask 261120   ;;  %s254_s24 = smov [#allocation8]  }
  0x1c   :  { %165 = vmatpush3.msra.mxu0 %v51_v1  ;;  %v158_v6 = vld [vmem:[%s289_s2] ss:$0 sm:$0xff]  ;;  %s147_s25 = sshll.u32 %s254_s24, 4  ;;  %s148_s25 = int_to_ptr.vmem [resolvable:$true] %s147_s25 }
  0x1d   :  { %166 = vmatprep.subr.mxu0 %v252_v0  ;;  %s222_s26 = scalar_lea.vmem %s148_s25, 128  ;;  %p227_p11 = scmp.lt.s32.totalorder %s148_s25, %s148_s25 }
  0x1e   :  { %167 = vmatpush3.msra.mxu0 %v50_v2  ;;  %p223_p10 = scmp.ne.s32.totalorder %s148_s25, %s222_s26  ;;  %p228_p12 = scmp.lt.s32.totalorder %s222_s26, %s222_s26 }
  0x1f   :  { %168 = vmatprep.subr.mxu0 %v252_v0 }
  0x20   :  { %169 = vmatpush3.msra.mxu0 %v49_v3  ;;  %p229_p13 = por %p228_p12, %p227_p11 }
  0x21   :  { %170 = vmatprep.subr.mxu0 %v252_v0 }
  0x22   :  { %171 = vmatpush3.msra.mxu0 %v48_v4  ;;  %p230_p0 = pnand %p229_p13, %p223_p10 }
  0x23   :  { %173 = vmatmul.mubr.msk.f32.vlgmr.msra.gmra.mxu0 %vm52_vm1, %v47_v5 }
  0xe3   :  { %v122_v7 = vpop.f32.mrf.mxu0 }
  0xe4   :  { %v139_v8 = vadd.f32 %v158_v6, %v122_v7 }
  0xe5   :  { %v174_v9 = vpop.f32.mrf.mxu0 }
  0xe6   :  { %140 = vst [vmem:[#allocation8] sm:$0xff] %v139_v8 }
  0xe7   :  { %233 = shalt.err (!%p230_p0)
}
  0xe8   :  { %150 = dma.vmem_to_hbm [thread:$0]  %s148_s25, 128, %s290_s3, [#allocation5]  }
  0xe9   :  { %246 = dma.done.wait [#allocation5], 128  }
  0xea   :  { %247 = vsyncadd [#allocation5], 4294967168 }
  0xeb   :  { %154 = vsyncpa [#allocation4], 1 }
  0xec   :  { %155 = vsyncpa [#allocation7], 1 }
  0xed   :  { %156 = vsyncpa [#allocation5], 1 }

</bundles_post_ra>
